<compile_context>
chip_gen: v7x
topology: tpu7x:2x2x1
jax: 0.10.0
libtpu: 0.0.40
codegen_flags: <defaults>
</compile_context>

<pallas_src>
import functools

import jax
import jax.numpy as jnp
from jax import lax
from jax.experimental import pallas as pl
from jax.experimental.pallas import tpu as pltpu


def _round_up(n: int, m: int) -> int:
    return ((n + m - 1) // m) * m


@functools.lru_cache(maxsize=None)
def _vmem_capacity_bytes() -> int:
    """Physical VMEM per TensorCore; conservative 64 MiB (v7x) fallback."""
    try:
        cap = int(pltpu.get_tpu_info().vmem_capacity_bytes)
        if cap > 0:
            return cap
    except Exception:
        pass
    return 64 * 1024 * 1024


def _block_vmem_bytes(S, D, R, x_bytes, c_bytes, o_bytes, bt) -> int:
    """Rough per-grid-step VMEM footprint (double-buffered blocks + temporaries).

    Dims are rounded to the (8, 128) VMEM tile so small shapes are not
    under-counted."""
    s_sub, s_lane = _round_up(S, 8), _round_up(S, 128)
    d_sub, d_lane = _round_up(D, 8), _round_up(D, 128)
    r_lane = _round_up(R, 128)
    x_blk = 2 * bt * s_sub * d_lane * x_bytes       # input block, double-buffered
    out_blk = 2 * bt * s_sub * s_lane * o_bytes     # output block, double-buffered
    proj_blk = 2 * d_sub * r_lane * c_bytes         # resident proj (default 2 bufs)
    # per-batch-element temporaries inside the kernel loop:
    # cast x slice, h (f32), gram + dist (f32)
    tmp = s_sub * d_lane * c_bytes + s_sub * r_lane * 4 + 2 * s_sub * s_lane * 4
    return x_blk + out_blk + proj_blk + tmp


@functools.lru_cache(maxsize=None)
def _choose_config(B, S, D, R, x_bytes, c_bytes, o_bytes,
                   max_batch_block=8, min_grid_steps=4):
    """Pick (batch_block, vmem_limit_bytes) for the current shapes / generation."""
    cap = _vmem_capacity_bytes()
    budget = int(cap * 0.7)
    # Keep >= min_grid_steps grid steps so DMA / compute / writeback overlap and
    # a 2-TensorCore chip (v7x) can shard the "parallel" batch axis; bt must
    # divide B so no batch padding (and no padded-output slice) is needed.
    bt_cap = max(1, min(max_batch_block, B // min(min_grid_steps, B)))
    bt = 1
    for cand in range(1, bt_cap + 1):
        if B % cand == 0 and _block_vmem_bytes(S, D, R, x_bytes, c_bytes,
                                               o_bytes, cand) <= budget:
            bt = cand
    footprint = _block_vmem_bytes(S, D, R, x_bytes, c_bytes, o_bytes, bt)
    # Right-size the scoped VMEM limit (+30% headroom), capped below physical.
    # NOTE: for very large S (>= ~1024 on v7x) a single (S, S) output block may
    # not fit even at bt=1; that regime would need (i, j) output tiling.
    vmem_limit = max(int(footprint * 1.3), 32 * 1024 * 1024)
    vmem_limit = min(vmem_limit, int(cap * 0.9))
    return bt, vmem_limit


def _psd_probe_kernel(x_ref, proj_ref, out_ref, *, compute_dtype,
                      gram_in_compute_dtype):
    # x_ref:    (bt, S, D) block of bt batch elements (input dtype)
    # proj_ref: (D, R)     full projection matrix, grid-resident (compute dtype)
    # out_ref:  (bt, S, S) pairwise squared distances (out dtype)
    bt = x_ref.shape[0]

    # Stream one batch element at a time: keeps live f32 temporaries to ~2*S^2
    # (vs 2*bt*S^2) so bt can grow within the VMEM budget.
    @pl.loop(0, bt)
    def _(b):
        xb = x_ref[b].astype(compute_dtype)                    # (S, D)
        # Low-rank projection on the MXU, f32 accumulation.
        h = jnp.dot(xb, proj_ref[...],
                    preferred_element_type=jnp.float32)        # (S, R) f32
        # Gram matrix on the MXU (f32 inputs by default: free accuracy while
        # memory-bound on v6e/v7x; bf16 inputs optionally for v5e).
        g = h.astype(compute_dtype) if gram_in_compute_dtype else h
        gram = lax.dot_general(g, g,
                               dimension_numbers=(((1,), (1,)), ((), ())),
                               preferred_element_type=jnp.float32)   # (S, S)
        # ||h_i||^2 / ||h_j||^2 from the Gram diagonal (masked reductions) so
        # dist[i, i] == 0 exactly, matching the reference (h_i - h_i == 0).
        s = gram.shape[0]
        row = lax.broadcasted_iota(jnp.int32, (s, s), 0)
        col = lax.broadcasted_iota(jnp.int32, (s, s), 1)
        diag = jnp.where(row == col, gram, 0.0)
        sq_i = jnp.sum(diag, axis=1, keepdims=True)            # (S, 1)
        sq_j = jnp.sum(diag, axis=0, keepdims=True)            # (1, S)
        dist = jnp.maximum(sq_i + sq_j - 2.0 * gram, 0.0)      # clamp cancellation
        out_ref[b] = dist.astype(out_ref.dtype)


@functools.partial(
    jax.jit,
    static_argnames=("compute_dtype", "out_dtype", "gram_in_compute_dtype",
                     "batch_block", "vmem_limit_bytes"))
def _psd_probe_call(x, proj, *, compute_dtype, out_dtype, gram_in_compute_dtype,
                    batch_block, vmem_limit_bytes):
    B, S, D = x.shape
    R = proj.shape[1]
    bt = batch_block

    # Mirrors `x = x.to(self.proj.dtype)` (no-op when dtypes already match);
    # the compute-dtype downcast happens per-block inside the kernel so no
    # extra full-tensor HBM round-trip is spent on a pre-cast copy.
    x = x.astype(proj.dtype)
    proj_c = proj.astype(compute_dtype)

    kernel = functools.partial(_psd_probe_kernel,
                               compute_dtype=compute_dtype,
                               gram_in_compute_dtype=gram_in_compute_dtype)

    return pl.pallas_call(
        kernel,
        out_shape=jax.ShapeDtypeStruct((B, S, S), out_dtype),
        grid_spec=pltpu.PrefetchScalarGridSpec(
            num_scalar_prefetch=0,
            grid=(B // bt,),
            in_specs=[
                # Blocks span the full S/D/R extents (legal: block dim == full
                # array dim), so no padding and no padded-output slice.
                pl.BlockSpec((bt, S, D), lambda b: (b, 0, 0)),   # batch block
                pl.BlockSpec((D, R), lambda b: (0, 0)),          # resident proj
            ],
            out_specs=pl.BlockSpec((bt, S, S), lambda b: (b, 0, 0)),
        ),
        compiler_params=pltpu.CompilerParams(
            dimension_semantics=("parallel",),
            vmem_limit_bytes=vmem_limit_bytes,
        ),
    )(x, proj_c)


def two_word_psd_probe(x: jax.Array, proj: jax.Array, *,
                       compute_dtype=jnp.bfloat16,
                       out_dtype=jnp.float32,
                       gram_in_compute_dtype: bool = False) -> jax.Array:
    """x: (B, S, D); proj: (D, R). Returns (B, S, S) pairwise squared distances."""
    B, S, D = x.shape
    D2, R = proj.shape
    assert D == D2, "model_dim mismatch between x and proj"

    bt, vmem_limit = _choose_config(
        B, S, D, R,
        jnp.dtype(proj.dtype).itemsize,     # x is stored in proj.dtype in HBM
        jnp.dtype(compute_dtype).itemsize,
        jnp.dtype(out_dtype).itemsize)

    return _psd_probe_call(
        x, proj,
        compute_dtype=compute_dtype,
        out_dtype=out_dtype,
        gram_in_compute_dtype=gram_in_compute_dtype,
        batch_block=bt,
        vmem_limit_bytes=vmem_limit)


if __name__ == "__main__":
    # Small shapes consistent with the module: batch=2, seq=8, model_dim=32, rank=16
    B, S, D, R = 2, 8, 32, 16
    key = jax.random.PRNGKey(0)
    kx, kp = jax.random.split(key)

    x = jax.random.normal(kx, (B, S, D), dtype=jnp.float32)
    # nn.init.uniform_(proj, -0.05, 0.05) -- deterministic synthetic init.
    proj = jax.random.uniform(kp, (D, R), dtype=jnp.float32,
                              minval=-0.05, maxval=0.05)

    # PyTorch-faithful reference in plain JAX (f32, explicit diff-square-sum).
    h_ref = x @ proj
    dist_ref = jnp.sum((h_ref[:, :, None, :] - h_ref[:, None, :, :]) ** 2, axis=-1)

    # f32 compute path (tolerance covers MXU f32 multi-pass + Gram-form
    # cancellation).
    dist_f32 = jax.block_until_ready(
        two_word_psd_probe(x, proj, compute_dtype=jnp.float32))
    assert dist_f32.shape == (B, S, S)
    assert jnp.allclose(dist_f32, dist_ref, atol=1e-2, rtol=1e-2)

    # Default fast path: bf16 projection matmul, f32 Gram, f32 output.
    dist_bf16 = jax.block_until_ready(two_word_psd_probe(x, proj))
    assert dist_bf16.shape == (B, S, S)
    assert jnp.allclose(dist_bf16, dist_ref, atol=2e-2, rtol=5e-2)

    print("KERNEL_OK")
</pallas_src>

<mosaic_0001>
module attributes {stable_mosaic.version = 11 : i64} {
  func.func @_psd_probe_kernel(%arg0: i32, %arg1: memref<1x8x32xf32, #tpu.memory_space<vmem>>, %arg2: memref<32x16xf32, #tpu.memory_space<vmem>>, %arg3: memref<1x8x8xf32, #tpu.memory_space<vmem>>) attributes {dimension_semantics = [#tpu.dimension_semantics<parallel>], iteration_bounds = array<i64: 2>, scalar_prefetch = 0 : i64, scratch_operands = 0 : i64, tpu.core_type = #tpu.core_type<tc>, window_params = [{transform_indices = @transform_0, window_bounds = array<i64: 1, 8, 32>}, {pipeline_mode = #tpu.pipeline_mode<synchronous>, transform_indices = @transform_1, window_bounds = array<i64: 32, 16>}, {transform_indices = @transform_2, window_bounds = array<i64: 1, 8, 8>}]} {
    %c0_i32 = arith.constant 0 : i32
    %c1_i32 = arith.constant 1 : i32
    %0 = arith.muli %c0_i32, %c1_i32 : i32
    %c0_i32_0 = arith.constant 0 : i32
    %1 = arith.addi %c0_i32_0, %0 : i32
    %2 = arith.index_cast %1 : i32 to index
    %c0 = arith.constant 0 : index
    %c0_1 = arith.constant 0 : index
    %3 = vector.load %arg1[%2, %c0, %c0_1] : memref<1x8x32xf32, #tpu.memory_space<vmem>>, vector<1x8x32xf32>
    %4 = vector.shape_cast %3 : vector<1x8x32xf32> to vector<8x32xf32>
    %c0_2 = arith.constant 0 : index
    %c0_3 = arith.constant 0 : index
    %5 = vector.load %arg2[%c0_2, %c0_3] : memref<32x16xf32, #tpu.memory_space<vmem>>, vector<32x16xf32>
    %cst = arith.constant dense<0.000000e+00> : vector<8x16xf32>
    %6 = tpu.matmul %4, %5, %cst {dimension_numbers = #tpu.dot_dimension_numbers<[1], [0], [0], [1], [0, 0, 1, 1], [], []>} : vector<8x32xf32>, vector<32x16xf32>, vector<8x16xf32> -> vector<8x16xf32>
    %cst_4 = arith.constant dense<0.000000e+00> : vector<8x8xf32>
    %7 = tpu.matmul %6, %6, %cst_4 {dimension_numbers = #tpu.dot_dimension_numbers<[1], [1], [0], [0], [0, 0, 1, 0], [], []>} : vector<8x16xf32>, vector<8x16xf32>, vector<8x8xf32> -> vector<8x8xf32>
    %8 = tpu.iota {dimensions = array<i32: 0>} : vector<8x8xi32>
    %9 = tpu.iota {dimensions = array<i32: 1>} : vector<8x8xi32>
    %10 = arith.cmpi eq, %8, %9 : vector<8x8xi32>
    %cst_5 = arith.constant 0.000000e+00 : f32
    %11 = vector.broadcast %cst_5 : f32 to vector<8x8xf32>
    %12 = arith.select %10, %7, %11 : vector<8x8xi1>, vector<8x8xf32>
    %cst_6 = arith.constant dense<0.000000e+00> : vector<8xf32>
    %13 = vector.multi_reduction <add>, %12, %cst_6 [1] : vector<8x8xf32> to vector<8xf32>
    %14 = vector.shape_cast %13 : vector<8xf32> to vector<8x1xf32>
    %cst_7 = arith.constant dense<0.000000e+00> : vector<8xf32>
    %15 = vector.multi_reduction <add>, %12, %cst_7 [0] : vector<8x8xf32> to vector<8xf32>
    %16 = vector.shape_cast %15 : vector<8xf32> to vector<1x8xf32>
    %17 = vector.broadcast %14 : vector<8x1xf32> to vector<8x8xf32>
    %18 = vector.broadcast %16 : vector<1x8xf32> to vector<8x8xf32>
    %19 = arith.addf %17, %18 : vector<8x8xf32>
    %cst_8 = arith.constant 2.000000e+00 : f32
    %20 = vector.broadcast %cst_8 : f32 to vector<8x8xf32>
    %21 = arith.mulf %20, %7 : vector<8x8xf32>
    %22 = arith.subf %19, %21 : vector<8x8xf32>
    %cst_9 = arith.constant 0.000000e+00 : f32
    %23 = vector.broadcast %cst_9 : f32 to vector<8x8xf32>
    %24 = arith.maximumf %22, %23 : vector<8x8xf32>
    %25 = arith.index_cast %1 : i32 to index
    %c0_10 = arith.constant 0 : index
    %c0_11 = arith.constant 0 : index
    %26 = vector.load %arg3[%25, %c0_10, %c0_11] : memref<1x8x8xf32, #tpu.memory_space<vmem>>, vector<1x8x8xf32>
    %27 = vector.shape_cast %26 : vector<1x8x8xf32> to vector<8x8xf32>
    %28 = vector.shape_cast %24 : vector<8x8xf32> to vector<1x8x8xf32>
    tpu.vector_store %arg3[%25, %c0_10, %c0_11], %28 {strides = array<i32>} : memref<1x8x8xf32, #tpu.memory_space<vmem>>, vector<1x8x8xf32>,
    %c1_i32_12 = arith.constant 1 : i32
    return
  }
  func.func @transform_0(%arg0: i32) -> (i32, i32, i32) {
    %c0_i32 = arith.constant 0 : i32
    %c0_i32_0 = arith.constant 0 : i32
    %c0_i32_1 = arith.constant 0 : i32
    return %arg0, %c0_i32, %c0_i32_0 : i32, i32, i32
  }
  func.func @transform_1(%arg0: i32) -> (i32, i32) {
    %c0_i32 = arith.constant 0 : i32
    %c0_i32_0 = arith.constant 0 : i32
    %c0_i32_1 = arith.constant 0 : i32
    return %c0_i32, %c0_i32_0 : i32, i32
  }
  func.func @transform_2(%arg0: i32) -> (i32, i32, i32) {
    %c0_i32 = arith.constant 0 : i32
    %c0_i32_0 = arith.constant 0 : i32
    %c0_i32_1 = arith.constant 0 : i32
    return %arg0, %c0_i32, %c0_i32_0 : i32, i32, i32
  }
}

</mosaic_0001>

<bundles_post_ra>
// kernel: _psd_probe_call.1
= control target key start
LH: loop header
LB: loop body
LE: loop exit
PB: predicated region body
PF: predicated region fallthrough
CT: control target
= control target key end

     0   :  { %7 = vsyncpa [#allocation3], 0  ;;  %s667_s0 = inlined_call_operand.vmem [shape: f32[2,8,32], index: 0, kind: input, shape index: {}]   ;;  %s668_s1 = inlined_call_operand.vmem [shape: f32[32,16], index: 1, kind: input, shape index: {}]   ;;  %s669_s2 = inlined_call_operand.hbm [shape: f32[2,8,8], index: 2, kind: output, shape index: {}]  }
   0x1   :  { %9 = vsyncpa [#allocation3 + $0x1], 0  ;;  %s553_s9 = smov 0   ;;  %s555_s10 = smov 0  }
   0x2   :  { %s557_s11 = smov 0   ;;  %s559_s12 = smov 0  }
   0x3 LB: > { %s574_s13 = sadd.s32 4294967295, %s532_s12   ;;  %s386_s14 = sadd.s32 4294967294, %s532_s12   ;;  %s532_s12 = sphi %s559_s12, %s675_s12   ;;  %s528_s11 = sphi %s557_s11, %s674_s11   ;;  %s524_s10 = sphi %s555_s10, %s673_s10   ;;  %s520_s9 = sphi %s553_s9, %s672_s9  }
   0x4   : > { %s578_s15 = sadd.s32 1, %s532_s12   ;;  %s69_s16 = sadd.s32 1, %s528_s11 }
   0x5   : > { %s66_s17 = ssub.s32 %s532_s12, %s578_s15  ;;  %p79_p0 = scmp.ne.s32.totalorder %s528_s11, %s524_s10 }
   0x6   : > { %p67_p1 = scmp.eq.s32.totalorder %s66_s17, 0  ;;  %p80_p2 = scmp.eq.s32.totalorder %s574_s13, 1 }
   0x7   : > { %p85_p3 = scmp.ne.s32.totalorder %s524_s10, %s520_s9  ;;  %p86_p4 = scmp.eq.s32.totalorder %s386_s14, 1 }
   0x8   : > { %s589_s18 = scalar_select %p67_p1, %s528_s11, %s69_s16  }
   0x9   : > { %p591_p5 = por %p80_p2, %p79_p0  ;;  %p595_p6 = por %p86_p4, %p85_p3 }
   0xa   : > { %p389_p7 = scmp.ge.s32.totalorder %s532_s12, 1  ;;  %p114_p8 = scmp.lt.s32.totalorder %s532_s12, 3 }
   0xc   : > { %p115_p9 = pnand %p389_p7, %p114_p8 }
   0xd   : > { %v140_v0 = vld [vmem:[%s668_s1] sm:$0xff] (!%p115_p9)  ;;  %v141_v1 = vld [vmem:[%s668_s1 + $0x8] sm:$0xff] (!%p115_p9)  ;;  %v142_v2 = vld [vmem:[%s668_s1 + $0x10] sm:$0xff] (!%p115_p9)  ;;  %v534_v3 = vmov (!%p115_p9), 0.0|0.0   ;;  %vm535_vm0 = vmmov (!%p115_p9), 0   ;;  %v536_v6 = vmov (!%p115_p9), 0.0   ;;  %v292_v11 = vlaneseq (!%p115_p9) }
   0xe   : > { %118 = sbr.rel (%p115_p9) target bundleno = 617 (0x269), region = 28  ;;  %422 = vmatprep.subr.bf16.mxu0 (!%p115_p9), %v534_v3  ;;  %v423_v4 = vpack.c.bf16 (!%p115_p9), %v141_v1, %v140_v0  ;;  %v143_v5 = vld [vmem:[%s668_s1 + $0x18] sm:$0xff] (!%p115_p9)  ;;  %414 = vmatprep.mubr.msk.f32.mxu0 (!%p115_p9), %vm535_vm0, %v536_v6  ;;  %p135_p10 = scmp.lt.s32.totalorder (!%p115_p9), %s574_s13, 1  ;;  %vm144_vm1 = vcmask (!%p115_p9), 261120   ;;  %vm218_vm2 = vcmask (!%p115_p9), 130048   ;;  %vm298_vm4 = vcmask (!%p115_p9), 64512  }
   0xf   : > { %417 = vmatprep.subr.mxu1 (!%p115_p9), %v536_v6  ;;  %419 = vmatprep.mubr.msk.f32.mxu1 (!%p115_p9), %vm535_vm0, %v536_v6  ;;  %v426_v7 = vpack.c.bf16 (!%p115_p9), %v143_v5, %v142_v2  ;;  %v293_v12 = vshrl.u32 (!%p115_p9), %v292_v11, 7  ;;  %v295_v13 = vand.u32 (!%p115_p9), 127, %v292_v11  ;;  %s132_s6 = sand.u32 (!%p115_p9), 1, %s524_s10   ;;  %s396_s8 = sshll.u32 (!%p115_p9), %s574_s13, 7 }
  0x10   : > { %424 = vmatpush3.bf16.msra.mxu0 (!%p115_p9), %v423_v4  ;;  %s390_s7 = sshll.u32 (!%p115_p9), %s132_s6, 3  ;;  %s624_s22 = scalar_lea.hbm (!%p115_p9), %s669_s2, %s396_s8 }
  0x11   : > { %425 = vmatprep.subr.bf16.mxu0 (!%p115_p9), %v534_v3  ;;  %vm296_vm3 = vcmp.eq.s32.totalorder (!%p115_p9), %v293_v12, %v295_v13  ;;  %s134_s14 = scalar_lea.vmem (!%p115_p9), [#allocation2], %s390_s7  ;;  %s314_s23 = scalar_lea.sflag (!%p115_p9), [#allocation3], %s132_s6 }
  0x12   : > { %s327_s16 = sshll.u32 (!%p115_p9), %s134_s14, 4  ;;  %s626_s16 = int_to_ptr.vmem [resolvable:$true] %s327_s16 }
  0x13   : > { %s470_s24 = scalar_lea.vmem (!%p115_p9), %s626_s16, 128 }
  0x14   : > { %427 = vmatpush3.bf16.msra.mxu0 (!%p115_p9), %v426_v7  ;;  %p471_p11 = scmp.ne.s32.totalorder (!%p115_p9), %s626_s16, %s470_s24 }
  0x15   : > { %s136_s29 = scalar_select %p135_p10, %s574_s13, 1 }
  0x16   : > { %p472_p12 = pnand %p471_p11, %p591_p5  ;;  %s537_s13 = smov [#allocation2]  }
  0x17   : > { %s391_s30 = sshll.u32 %s136_s29, 3  ;;  %s474_s25 = sshll.u32 %s537_s13, 4  ;;  %s475_s25 = int_to_ptr.vmem [resolvable:$false] %s474_s25 }
  0x18   : > { %s138_s5 = scalar_lea.vmem %s667_s0, %s391_s30  ;;  %p473_p13 = pneg %p472_p12 }
  0x19   : > { %v139_v8 = vld [vmem:[%s138_s5] sm:$0xff]  ;;  %s476_s26 = scalar_lea.vmem %s475_s25, 256  ;;  %p477_p0 = scmp.lt.s32.totalorder %s626_s16, %s475_s25 }
  0x1a   : > { %415 = vmatmul.mubr.msk.f32.vlgmr.msra.gmra.mrb[0].mxu0 %vm144_vm1, %v139_v8  ;;  %p478_p1 = scmp.lt.s32.totalorder %s476_s26, %s470_s24 }
  0x1c   : > { %p479_p2 = por %p478_p1, %p477_p0 }
  0x1e   : > { %p480_p3 = pnand %p479_p2, %p473_p13 }
  0xed   : > { %v214_v9 = vpop.f32.mrb[0].mxu0 }
  0xee   : > { %v416_v10 = vpop.f32.mrb[1].mxu0  ;;  %418 = vmatpush3.xpose.msk.msra.mxu1 %vm218_vm2, %v214_v9 }
  0xf1   : > { %420 = vmatmul.mubr.msk.f32.vlgmr.msra.gmra.mrb[0].mxu1 %vm218_vm2, %v214_v9 }
 0x1c4   : > { %v288_v14 = vpop.f32.mrb[0].mxu1 }
 0x1c5   : > { %v297_v15 = vsel %vm296_vm3, %v288_v14, 0.0  ;;  %v421_v16 = vpop.f32.mrb[1].mxu1  ;;  %v309_v25 = vmul.f32 2.0, %v288_v14 }
 0x1c6   : > { %v299_v17 = vsel %vm298_vm4, %v297_v15, 0.0 }
 0x1c7   : > { %300 = vadd.xlane.f32.xlu0 %v299_v17  ;;  %v302_v18 = vrot.slane %v299_v17, 4 }
 0x1c9   : > { %v303_v19 = vadd.f32 %v302_v18, %v299_v17 }
 0x1cb   : > { %v304_v20 = vrot.slane %v303_v19, 2 }
 0x1cd   : > { %v305_v21 = vadd.f32 %v304_v20, %v303_v19 }
 0x1cf   : > { %v306_v22 = vrot.slane %v305_v21, 1 }
 0x1d1   : > { %v307_v23 = vadd.f32 %v306_v22, %v305_v21 }
 0x254   : > { %v301_v24 = vpop.xlane.xlu0 %300 }
 0x255   : > { %v308_v26 = vadd.f32 %v307_v23, %v301_v24 }
 0x257   : > { %v310_v27 = vsub.f32 %v308_v26, %v309_v25 }
 0x259   : > { %v311_v28 = vmax.f32 %v310_v27, 0.0 }
 0x25b   : > { %312 = vst.msk [vmem:[%s134_s14] sm:$0xff] %vm298_vm4, %v311_v28 }
 0x25c   : > { %483 = shalt.err (!%p480_p3)
}
 0x25d   : > { %s484_s27 = scalar_lea.hbm %s624_s22, 128  ;;  %s488_s30 = scalar_lea.hbm %s669_s2, 256 }
 0x25e   : > { %p485_p4 = scmp.ne.s32.totalorder %s624_s22, %s484_s27  ;;  %p489_p9 = scmp.lt.u32.totalorder %s624_s22, %s669_s2 }
 0x25f   : > { %p490_p10 = scmp.lt.u32.totalorder %s488_s30, %s484_s27  ;;  %p492_p12 = scmp.lt.u32.totalorder %s484_s27, %s624_s22 }
 0x260   : > { %p486_p7 = pnand %p485_p4, %p591_p5 }
 0x261   : > { %p491_p11 = por %p490_p10, %p489_p9 }
 0x262   : > { %p487_p8 = pneg %p486_p7 }
 0x263   : > { %p493_p13 = por %p492_p12, %p491_p11 }
 0x265   : > { %p494_p0 = pnand %p493_p13, %p487_p8 }
 0x267   : > { %497 = shalt.err (!%p494_p0)
}
 0x268   : > { %428 = dma.vmem_to_hbm [thread:$0]  (%p591_p5), %s626_s16, 128, %s624_s22, %s314_s23  }
 0x269 PF: > { %p434_p1 = scmp.ge.s32.totalorder %s532_s12, 2  ;;  %s339_s5 = sand.u32 1, %s520_s9  }
 0x26a   : > { %s340_s6 = scalar_lea.sflag [#allocation3], %s339_s5 }
 0x26b   : > { %p431_p2 = pnand %p434_p1, %p595_p6 }
 0x26d   : > { %515 = dma.done.wait (!%p431_p2), %s340_s6, 128  }
 0x26e   : > { %517 = vsyncadd (!%p431_p2), %s340_s6, 4294967168  ;;  %p12_p3 = scmp.ge.s32.totalorder %s578_s15, 4   ;;  %s672_s9 = smov %s524_s10 }
 0x26f   : > { %s673_s10 = smov %s528_s11  ;;  %s674_s11 = smov %s589_s18 }
 0x270   : > { %s675_s12 = smov %s578_s15  ;;  %14 = sbr.rel (!%p12_p3) target bundleno = 3 (0x3), region = 63 }
 0x277   :  { %345 = vsyncpa [#allocation3], 1 }
 0x278   :  { %347 = vsyncpa [#allocation3 + $0x1], 1 }

</bundles_post_ra>
